<compile_context>
chip_gen: v6e
topology: v6e:2x2x1
jax: 0.10.0
libtpu: 0.0.40
codegen_flags: <defaults>
</compile_context>

<pallas_src>
import functools

import jax
import jax.numpy as jnp
from jax.experimental import pallas as pl
from jax.experimental.pallas import tpu as pltpu


def _layernorm_kernel(x_ref, gain_ref, bias_ref, o_ref, *, epsilon, hidden):
    # x_ref: (block_rows, hidden); gain_ref/bias_ref: (1, hidden), already f32.
    x = x_ref[...].astype(jnp.float32)

    # Fused single-pass statistics: one sweep produces sum and sum-of-squares
    # (halves the XLU cross-lane reduction chain vs. the two-pass centered form).
    s = jnp.sum(x, axis=-1, keepdims=True)
    sq = jnp.sum(x * x, axis=-1, keepdims=True)
    mean = s * (1.0 / hidden)
    denom = max(hidden - 1, 1)                      # torch.std is unbiased (ddof=1)
    var = (sq - s * mean) * (1.0 / denom)
    var = jnp.maximum(var, 0.0)                     # guard tiny negatives from cancellation
    std = jnp.sqrt(var)

    # EUP approx reciprocal keeps the VALU slots free; two Newton-Raphson steps on the
    # per-row (block_rows, 1) value restore full f32 accuracy at negligible cost.
    d = std + epsilon
    inv = pl.reciprocal(d, approx=True)
    inv = inv * (2.0 - d * inv)
    inv = inv * (2.0 - d * inv)

    gain = gain_ref[...]                            # (1, hidden) f32 (cast hoisted to wrapper)
    bias = bias_ref[...]
    out = (x - mean) * inv * gain + bias
    o_ref[...] = out.astype(o_ref.dtype)


def _vmem_capacity_bytes():
    # Per-generation VMEM: 128 MiB on v5e/v6e, 64 MiB per TensorCore on v7x.
    try:
        info = pltpu.get_tpu_info()
        cap = getattr(info, "vmem_capacity_bytes", None)
        if cap:
            return int(cap)
    except Exception:
        pass
    return 64 * 1024 * 1024  # conservative fallback (v7x per-TC physical VMEM)


def _pick_block_rows(rows, hidden, in_itemsize, out_itemsize):
    # Sublane packing: 8 rows/vreg for 32-bit inputs, 16 for 16-bit inputs.
    sub = 16 if in_itemsize < 4 else 8

    vmem_cap = _vmem_capacity_bytes()
    # Budget for double-buffered input + output tiles plus f32 intermediates, with headroom.
    budget = int(vmem_cap * 0.35)
    per_row = hidden * (2 * in_itemsize + 2 * out_itemsize + 2 * 4)
    br = budget // max(per_row, 1)
    # Keep each input DMA in the ~1-8 MiB range (mem-bound sweet spot).
    br = min(br, (8 * 1024 * 1024) // max(hidden * in_itemsize, 1))
    br = min(br, 4096)
    br = max(sub, (br // sub) * sub)

    if rows <= sub:
        return rows                       # single block equal to the full row extent
    return min(br, (rows // sub) * sub)   # multiple of the sublane pack, never > rows


def layer_normalization(x, gain, bias, epsilon=1e-6, block_rows=None):
    """x: (..., hidden); gain, bias: (hidden,). Returns same shape/dtype as x."""
    orig_shape = x.shape
    hidden = orig_shape[-1]
    rows = 1
    for d in orig_shape[:-1]:
        rows *= d

    x2 = x.reshape(rows, hidden)
    # Precast params to f32 once in the wrapper (no per-block casts / re-broadcasts).
    gain2 = gain.reshape(1, hidden).astype(jnp.float32)
    bias2 = bias.reshape(1, hidden).astype(jnp.float32)

    in_itemsize = jnp.dtype(x.dtype).itemsize
    out_itemsize = in_itemsize
    if block_rows is None:
        block_rows = _pick_block_rows(rows, hidden, in_itemsize, out_itemsize)

    # cdiv grid: the partial tail block is handled by Pallas (OOB input reads are
    # unspecified, OOB output writes are dropped; rows are independent, so this is safe).
    grid = (pl.cdiv(rows, block_rows),)

    # Scoped VMEM limit sized to the chosen tile, capped below physical capacity.
    vmem_cap = _vmem_capacity_bytes()
    tile_bytes = block_rows * hidden * (2 * in_itemsize + 2 * out_itemsize + 2 * 4)
    vmem_limit = int(min(vmem_cap * 3 // 4, max(32 * 1024 * 1024, 2 * tile_bytes)))

    kernel = functools.partial(_layernorm_kernel, epsilon=epsilon, hidden=hidden)

    out = pl.pallas_call(
        kernel,
        out_shape=jax.ShapeDtypeStruct((rows, hidden), x.dtype),
        grid_spec=pltpu.PrefetchScalarGridSpec(
            num_scalar_prefetch=0,
            grid=grid,
            in_specs=[
                pl.BlockSpec((block_rows, hidden), lambda i: (i, 0)),
                pl.BlockSpec((1, hidden), lambda i: (0, 0)),
                pl.BlockSpec((1, hidden), lambda i: (0, 0)),
            ],
            out_specs=pl.BlockSpec((block_rows, hidden), lambda i: (i, 0)),
        ),
        compiler_params=pltpu.CompilerParams(
            dimension_semantics=("parallel",),
            vmem_limit_bytes=vmem_limit,
        ),
    )(x2, gain2, bias2)

    return out.reshape(orig_shape)


if __name__ == "__main__":
    key = jax.random.PRNGKey(0)
    batch, seq, hidden = 2, 8, 32  # normalized_shape = hidden = 32

    x = jax.random.normal(key, (batch, seq, hidden), dtype=jnp.float32)

    # Deterministic parameter init matching nn.Parameter(th.ones/zeros(normalized_shape))
    gain = jnp.ones((hidden,), dtype=jnp.float32)
    bias = jnp.zeros((hidden,), dtype=jnp.float32)

    out = layer_normalization(x, gain, bias, epsilon=1e-6)
    out = jax.block_until_ready(out)

    # Pure-JAX reference (torch.std is unbiased, ddof=1; note: std + eps, not sqrt(var + eps))
    mean = jnp.mean(x, axis=-1, keepdims=True)
    std = jnp.std(x, axis=-1, keepdims=True, ddof=1)
    ref = gain * (x - mean) / (std + 1e-6) + bias
    assert jnp.allclose(out, ref, atol=1e-5, rtol=1e-5), "mismatch vs reference"

    print("KERNEL_OK")
</pallas_src>

<mosaic_0001>
module attributes {stable_mosaic.version = 11 : i64} {
  func.func @_layernorm_kernel(%arg0: i32, %arg1: memref<16x32xf32, #tpu.memory_space<vmem>>, %arg2: memref<1x32xf32, #tpu.memory_space<vmem>>, %arg3: memref<1x32xf32, #tpu.memory_space<vmem>>, %arg4: memref<16x32xf32, #tpu.memory_space<vmem>>) attributes {dimension_semantics = [#tpu.dimension_semantics<parallel>], iteration_bounds = array<i64: 1>, scalar_prefetch = 0 : i64, scratch_operands = 0 : i64, tpu.core_type = #tpu.core_type<tc>, window_params = [{transform_indices = @transform_0, window_bounds = array<i64: 16, 32>}, {pipeline_mode = #tpu.pipeline_mode<synchronous>, transform_indices = @transform_1, window_bounds = array<i64: 1, 32>}, {pipeline_mode = #tpu.pipeline_mode<synchronous>, transform_indices = @transform_2, window_bounds = array<i64: 1, 32>}, {transform_indices = @transform_3, window_bounds = array<i64: 16, 32>}]} {
    %c0 = arith.constant 0 : index
    %c0_0 = arith.constant 0 : index
    %0 = vector.load %arg1[%c0, %c0_0] : memref<16x32xf32, #tpu.memory_space<vmem>>, vector<16x32xf32>
    %cst = arith.constant dense<0.000000e+00> : vector<16xf32>
    %1 = vector.multi_reduction <add>, %0, %cst [1] : vector<16x32xf32> to vector<16xf32>
    %2 = vector.shape_cast %1 : vector<16xf32> to vector<16x1xf32>
    %3 = arith.mulf %0, %0 : vector<16x32xf32>
    %cst_1 = arith.constant dense<0.000000e+00> : vector<16xf32>
    %4 = vector.multi_reduction <add>, %3, %cst_1 [1] : vector<16x32xf32> to vector<16xf32>
    %5 = vector.shape_cast %4 : vector<16xf32> to vector<16x1xf32>
    %cst_2 = arith.constant 3.125000e-02 : f32
    %6 = vector.broadcast %cst_2 : f32 to vector<16x1xf32>
    %7 = arith.mulf %2, %6 : vector<16x1xf32>
    %8 = arith.mulf %2, %7 : vector<16x1xf32>
    %9 = arith.subf %5, %8 : vector<16x1xf32>
    %cst_3 = arith.constant 0.0322580636 : f32
    %10 = vector.broadcast %cst_3 : f32 to vector<16x1xf32>
    %11 = arith.mulf %9, %10 : vector<16x1xf32>
    %cst_4 = arith.constant 0.000000e+00 : f32
    %12 = vector.broadcast %cst_4 : f32 to vector<16x1xf32>
    %13 = arith.maximumf %11, %12 : vector<16x1xf32>
    %14 = math.sqrt %13 : vector<16x1xf32>
    %cst_5 = arith.constant 9.99999997E-7 : f32
    %15 = vector.broadcast %cst_5 : f32 to vector<16x1xf32>
    %16 = arith.addf %14, %15 : vector<16x1xf32>
    %17 = tpu.reciprocal %16 {approx = true} : vector<16x1xf32> -> vector<16x1xf32>
    %18 = arith.mulf %16, %17 : vector<16x1xf32>
    %cst_6 = arith.constant 2.000000e+00 : f32
    %19 = vector.broadcast %cst_6 : f32 to vector<16x1xf32>
    %20 = arith.subf %19, %18 : vector<16x1xf32>
    %21 = arith.mulf %17, %20 : vector<16x1xf32>
    %22 = arith.mulf %16, %21 : vector<16x1xf32>
    %cst_7 = arith.constant 2.000000e+00 : f32
    %23 = vector.broadcast %cst_7 : f32 to vector<16x1xf32>
    %24 = arith.subf %23, %22 : vector<16x1xf32>
    %25 = arith.mulf %21, %24 : vector<16x1xf32>
    %c0_8 = arith.constant 0 : index
    %c0_9 = arith.constant 0 : index
    %26 = vector.load %arg2[%c0_8, %c0_9] : memref<1x32xf32, #tpu.memory_space<vmem>>, vector<1x32xf32>
    %c0_10 = arith.constant 0 : index
    %c0_11 = arith.constant 0 : index
    %27 = vector.load %arg3[%c0_10, %c0_11] : memref<1x32xf32, #tpu.memory_space<vmem>>, vector<1x32xf32>
    %28 = vector.broadcast %7 : vector<16x1xf32> to vector<16x32xf32>
    %29 = arith.subf %0, %28 : vector<16x32xf32>
    %30 = vector.broadcast %25 : vector<16x1xf32> to vector<16x32xf32>
    %31 = arith.mulf %29, %30 : vector<16x32xf32>
    %32 = vector.broadcast %26 : vector<1x32xf32> to vector<16x32xf32>
    %33 = arith.mulf %31, %32 : vector<16x32xf32>
    %34 = vector.broadcast %27 : vector<1x32xf32> to vector<16x32xf32>
    %35 = arith.addf %33, %34 : vector<16x32xf32>
    %c0_12 = arith.constant 0 : index
    %c0_13 = arith.constant 0 : index
    %36 = vector.load %arg4[%c0_12, %c0_13] : memref<16x32xf32, #tpu.memory_space<vmem>>, vector<16x32xf32>
    tpu.vector_store %arg4[%c0_12, %c0_13], %35 {strides = array<i32>} : memref<16x32xf32, #tpu.memory_space<vmem>>, vector<16x32xf32>,
    return
  }
  func.func @transform_0(%arg0: i32) -> (i32, i32) {
    %c0_i32 = arith.constant 0 : i32
    %c0_i32_0 = arith.constant 0 : i32
    return %arg0, %c0_i32 : i32, i32
  }
  func.func @transform_1(%arg0: i32) -> (i32, i32) {
    %c0_i32 = arith.constant 0 : i32
    %c0_i32_0 = arith.constant 0 : i32
    %c0_i32_1 = arith.constant 0 : i32
    return %c0_i32, %c0_i32_0 : i32, i32
  }
  func.func @transform_2(%arg0: i32) -> (i32, i32) {
    %c0_i32 = arith.constant 0 : i32
    %c0_i32_0 = arith.constant 0 : i32
    %c0_i32_1 = arith.constant 0 : i32
    return %c0_i32, %c0_i32_0 : i32, i32
  }
  func.func @transform_3(%arg0: i32) -> (i32, i32) {
    %c0_i32 = arith.constant 0 : i32
    %c0_i32_0 = arith.constant 0 : i32
    return %arg0, %c0_i32 : i32, i32
  }
}

</mosaic_0001>

<bundles_post_ra>
// kernel: tpu_custom_call.1
= control target key start
LH: loop header
LB: loop body
LE: loop exit
PB: predicated region body
PF: predicated region fallthrough
CT: control target
= control target key end

     0   :  { %8 = vsyncpa [#allocation3], 0  ;;  %s239_s0 = inlined_call_operand.hbm [shape: f32[16,32], index: 0, kind: input, shape index: {}]   ;;  %s240_s1 = inlined_call_operand.vmem [shape: f32[1,32], index: 1, kind: input, shape index: {}]   ;;  %s241_s2 = inlined_call_operand.vmem [shape: f32[1,32], index: 2, kind: input, shape index: {}]   ;;  %s242_s3 = inlined_call_operand.hbm [shape: f32[16,32], index: 3, kind: output, shape index: {}]  }
   0x1   :  { %9 = vsyncpa [#allocation4], 0  ;;  %s185_s12 = smov [#allocation2]  }
   0x2   :  { %s15_s13 = sshll.u32 %s185_s12, 4  ;;  %s16_s13 = int_to_ptr.vmem [resolvable:$true] %s15_s13 }
   0x3   :  { %s149_s14 = scalar_lea.vmem %s16_s13, 256  ;;  %p154_p1 = scmp.lt.s32.totalorder %s16_s13, %s16_s13 }
   0x4   :  { %p150_p0 = scmp.ne.s32.totalorder %s16_s13, %s149_s14  ;;  %p155_p2 = scmp.lt.s32.totalorder %s149_s14, %s149_s14 }
   0x6   :  { %p156_p3 = por %p155_p2, %p154_p1 }
   0x8   :  { %p157_p4 = pnand %p156_p3, %p150_p0 }
   0xa   :  { %160 = shalt.err (!%p157_p4)
}
   0xb   :  { %s186_s15 = smov 128   ;;  %s187_s16 = smov 8  }
   0xc   :  { %21 = dma.hbm_to_vmem [thread:$0]  %s239_s0, 256, %s16_s13, [#allocation3], %s186_s15, %s186_s15, %s187_s16  }
   0xd   :  { %181 = dma.done.wait [#allocation3], 256  }
   0xe   :  { %182 = vsyncadd [#allocation3], 4294967040  ;;  %vm31_vm0 = vcmask 261120   ;;  %v29_v0 = vld [vmem:[#allocation2] sm:$0xff]  ;;  %v215_v1 = vld [vmem:[#allocation2 + $0x8] sm:$0xff]  ;;  %s188_s22 = smov [#allocation5]  }
   0xf   :  { %v32_v2 = vsel %vm31_vm0, %v29_v0, 0.0  ;;  %v38_v3 = vmul.f32 %v29_v0, %v29_v0  ;;  %v39_v4 = vmul.f32 %v215_v1, %v215_v1  ;;  %v35_v6 = vsel %vm31_vm0, %v215_v1, 0.0  ;;  %v127_v47 = vld [vmem:[%s240_s1] ss:$0 sm:$0xff]  ;;  %s115_s23 = sshll.u32 %s188_s22, 4  ;;  %s116_s23 = int_to_ptr.vmem [resolvable:$true] %s115_s23 }
  0x10   :  { %33 = vadd.xlane.f32.xlu0 %v32_v2  ;;  %v128_v50 = vld [vmem:[%s241_s2] ss:$0 sm:$0xff]  ;;  %s161_s1 = scalar_lea.vmem %s116_s23, 256  ;;  %p166_p6 = scmp.lt.s32.totalorder %s116_s23, %s116_s23 }
  0x11   :  { %v40_v5 = vsel %vm31_vm0, %v38_v3, 0.0  ;;  %v43_v7 = vsel %vm31_vm0, %v39_v4, 0.0  ;;  %p162_p5 = scmp.ne.s32.totalorder %s116_s23, %s161_s1  ;;  %p167_p7 = scmp.lt.s32.totalorder %s161_s1, %s161_s1 }
  0x12   :  { %41 = vadd.xlane.f32.xlu1 %v40_v5 }
  0x13   :  { %p168_p8 = por %p167_p7, %p166_p6 }
  0x14   :  { %36 = vadd.xlane.f32.xlu0 %v35_v6 }
  0x15   :  { %p169_p9 = pnand %p168_p8, %p162_p5 }
  0x16   :  { %44 = vadd.xlane.f32.xlu1 %v43_v7 }
  0x99   :  { %v34_v8 = vpop.xlane.xlu0 %33 }
  0x9a   :  { %v46_v9 = vmul.f32 0.03125, %v34_v8 }
  0x9b   :  { %v42_v10 = vpop.xlane.xlu1 %41 }
  0x9c   :  { %v48_v11 = vmul.f32 %v46_v9, %v34_v8  ;;  %v88_v44 = vsub.f32 %v29_v0, %v46_v9 }
  0x9d   :  { %v37_v12 = vpop.xlane.xlu0 %36 }
  0x9e   :  { %v50_v13 = vsub.f32 %v42_v10, %v48_v11  ;;  %v47_v14 = vmul.f32 0.03125, %v37_v12 }
  0x9f   :  { %v45_v15 = vpop.xlane.xlu1 %44 }
  0xa0   :  { %v52_v16 = vmul.f32 0.032258064, %v50_v13  ;;  %v49_v17 = vmul.f32 %v47_v14, %v37_v12  ;;  %v89_v52 = vsub.f32 %v215_v1, %v47_v14 }
  0xa2   :  { %v54_v18 = vmax.f32 %v52_v16, 0.0  ;;  %v51_v19 = vsub.f32 %v45_v15, %v49_v17 }
  0xa4   :  { %133 = vrsqrt.f32 %v54_v18  ;;  %v53_v20 = vmul.f32 0.032258064, %v51_v19  ;;  %vm58_vm1 = vcmp.eq.f32.partialorder %v54_v18, inf  ;;  %v61_v24 = vand.u32 2147483648, %v54_v18 }
  0xa5   :  { %vm60_vm2 = vcmp.eq.f32.partialorder %v54_v18, 0.0 }
  0xa6   :  { %v55_v21 = vmax.f32 %v53_v20, 0.0 }
  0xa8   :  { %135 = vrsqrt.f32 %v55_v21  ;;  %vm65_vm3 = vcmp.eq.f32.partialorder %v55_v21, inf  ;;  %v68_v30 = vand.u32 2147483648, %v55_v21  ;;  %vm67_vm4 = vcmp.eq.f32.partialorder %v55_v21, 0.0 }
  0xb1   :  { %v134_v22 = vpop.eup %133 }
  0xb2   :  { %v57_v23 = vmul.f32 %v134_v22, %v54_v18 }
  0xb4   :  { %v59_v25 = vsel %vm58_vm1, %v54_v18, %v57_v23 }
  0xb5   :  { %v62_v26 = vsel %vm60_vm2, %v61_v24, %v59_v25  ;;  %v136_v27 = vpop.eup %135 }
  0xb6   :  { %v70_v28 = vadd.f32 1e-06, %v62_v26  ;;  %v64_v29 = vmul.f32 %v136_v27, %v55_v21 }
  0xb8   :  { %137 = vrcp.f32 %v70_v28  ;;  %v66_v31 = vsel %vm65_vm3, %v55_v21, %v64_v29 }
  0xb9   :  { %v69_v32 = vsel %vm67_vm4, %v68_v30, %v66_v31 }
  0xba   :  { %v71_v33 = vadd.f32 1e-06, %v69_v32 }
  0xbc   :  { %139 = vrcp.f32 %v71_v33 }
  0xc5   :  { %v138_v34 = vpop.eup %137 }
  0xc6   :  { %v74_v35 = vmul.f32 %v138_v34, %v70_v28 }
  0xc8   :  { %v76_v36 = vsub.f32 2.0, %v74_v35 }
  0xc9   :  { %v140_v37 = vpop.eup %139 }
  0xca   :  { %v78_v38 = vmul.f32 %v138_v34, %v76_v36  ;;  %v75_v39 = vmul.f32 %v140_v37, %v71_v33 }
  0xcc   :  { %v80_v40 = vmul.f32 %v78_v38, %v70_v28  ;;  %v77_v41 = vsub.f32 2.0, %v75_v39 }
  0xce   :  { %v82_v42 = vsub.f32 2.0, %v80_v40  ;;  %v79_v43 = vmul.f32 %v140_v37, %v77_v41 }
  0xd0   :  { %v84_v45 = vmul.f32 %v82_v42, %v78_v38  ;;  %v81_v46 = vmul.f32 %v79_v43, %v71_v33 }
  0xd2   :  { %v90_v48 = vmul.f32 %v88_v44, %v84_v45  ;;  %v83_v49 = vsub.f32 2.0, %v81_v46 }
  0xd4   :  { %v98_v51 = vmul.f32 %v127_v47, %v90_v48  ;;  %v85_v53 = vmul.f32 %v83_v49, %v79_v43 }
  0xd6   :  { %v106_v54 = vadd.f32 %v128_v50, %v98_v51  ;;  %v91_v55 = vmul.f32 %v89_v52, %v85_v53 }
  0xd8   :  { %108 = vst.msk [vmem:[#allocation5] sm:$0xff] %vm31_vm0, %v106_v54  ;;  %v99_v56 = vmul.f32 %v127_v47, %v91_v55 }
  0xda   :  { %v107_v57 = vadd.f32 %v128_v50, %v99_v56 }
  0xdc   :  { %109 = vst.msk [vmem:[#allocation5 + $0x8] sm:$0xff] %vm31_vm0, %v107_v57 }
  0xdd   :  { %172 = shalt.err (!%p169_p9)
}
  0xde   :  { %121 = dma.vmem_to_hbm [thread:$0]  %s116_s23, 256, %s242_s3, [#allocation4], %s186_s15, %s186_s15, %s187_s16  }
  0xdf   :  { %183 = dma.done.wait [#allocation4], 256  }
  0xe0   :  { %184 = vsyncadd [#allocation4], 4294967040 }
  0xe1   :  { %125 = vsyncpa [#allocation3], 1 }
  0xe2   :  { %126 = vsyncpa [#allocation4], 1 }

</bundles_post_ra>
